<compile_context>
chip_gen: v5e
topology: v5e:2x2
jax: 0.10.0
libtpu: 0.0.40
codegen_flags: <defaults>
</compile_context>

<pallas_src>
import functools
import numpy as np
import jax
import jax.numpy as jnp
from jax.experimental import pallas as pl
from jax.experimental.pallas import tpu as pltpu

BN_EPS = 1e-3
VMEM_LIMIT = 32 * 1024 * 1024   # our tiles stay far below this on v5e/v6e/v7x


def _round_up(x, m):
    return (x + m - 1) // m * m


def _pick_tm(M):
    """Row-tile size: >=2 tiles whenever M allows (keeps both v7x TCs busy), multiples of 16
    for bf16 sublane packing, capped at 512 to stay comfortably inside v7x's 64 MiB VMEM."""
    if M >= 4096:
        return 512
    if M >= 1024:
        return 256
    if M >= 256:
        return 128
    if M >= 32:
        return _round_up((M + 1) // 2, 16)   # split into 2 tiles
    return _round_up(max(M, 16), 16)


# ---------------------------------------------------------------------------
# Pallas kernel: fused (im2col-matmul + bias + ReLU + sparsity mask) per row tile.
# grid = (row_tiles,).  Scalar-prefetched per-tile occupancy skips dead tiles.
# ---------------------------------------------------------------------------
def _fused_conv_kernel(occ_ref, x_ref, w_ref, b_ref, m_ref, o_ref, *, relu):
    i = pl.program_id(0)

    @pl.when(occ_ref[i] > 0)
    def _():
        y = jnp.dot(x_ref[...], w_ref[...], preferred_element_type=jnp.float32)
        y = y + b_ref[...]
        if relu:
            y = jnp.maximum(y, 0.0)
        o_ref[...] = (y * m_ref[...]).astype(o_ref.dtype)

    @pl.when(occ_ref[i] == 0)
    def _():
        o_ref[...] = jnp.zeros_like(o_ref)


def _fused_matmul_call(x2d, w, bias, mask_rows, occ, relu, tm, out_dtype=jnp.bfloat16):
    """x2d: [Mp, K] bf16; w: [K, Coutp] bf16 (VMEM-resident); bias: [1, Coutp] f32;
    mask_rows: [Mp, 1] f32; occ: [Mp//tm] int32 (scalar prefetch)  ->  [Mp, Coutp] bf16."""
    Mp, K = x2d.shape
    Coutp = w.shape[-1]
    n_tiles = Mp // tm
    return pl.pallas_call(
        functools.partial(_fused_conv_kernel, relu=relu),
        out_shape=jax.ShapeDtypeStruct((Mp, Coutp), out_dtype),
        grid_spec=pltpu.PrefetchScalarGridSpec(
            num_scalar_prefetch=1,
            grid=(n_tiles,),
            in_specs=[
                pl.BlockSpec((tm, K), lambda i, occ: (i, 0)),
                pl.BlockSpec((K, Coutp), lambda i, occ: (0, 0)),    # resident weights
                pl.BlockSpec((1, Coutp), lambda i, occ: (0, 0)),    # resident bias
                pl.BlockSpec((tm, 1), lambda i, occ: (i, 0)),
            ],
            out_specs=pl.BlockSpec((tm, Coutp), lambda i, occ: (i, 0)),
        ),
        compiler_params=pltpu.CompilerParams(
            dimension_semantics=("parallel",),
            vmem_limit_bytes=VMEM_LIMIT),
    )(occ, x2d, w, bias, mask_rows)


def _tile_occupancy(mask_rows, tm):
    Mp = mask_rows.shape[0]
    return (mask_rows.reshape(Mp // tm, tm).max(axis=1) > 0).astype(jnp.int32)


# ---------------------------------------------------------------------------
# Sparse-conv building blocks on the dense representation
# ---------------------------------------------------------------------------
@functools.partial(jax.jit,
                   static_argnames=("ksize", "stride", "padding", "subm", "relu", "cout"))
def sparse_conv3d(x, mask, w_flat, bias, *, ksize, stride, padding, subm, relu, cout):
    """SubMConv3d / SparseConv3d (+ folded BN + ReLU).
    w_flat: [kvol*Cin, Coutp] bf16 (tap-major rows, BN folded, Cout lane-padded)."""
    B, D, H, W, Cin = x.shape
    kd, kh, kw = ksize
    sd, sh, sw = stride
    pd, ph, pw = padding
    Do = (D + 2 * pd - kd) // sd + 1
    Ho = (H + 2 * ph - kh) // sh + 1
    Wo = (W + 2 * pw - kw) // sw + 1
    M = B * Do * Ho * Wo
    tm = _pick_tm(M)
    Mp = _round_up(M, tm)

    xb = x.astype(jnp.bfloat16)
    xp = jnp.pad(xb, ((0, 0), (pd, pd), (ph, ph), (pw, pw), (0, 0)))

    # im2col: taps folded into the contraction dim -> [M, kvol*Cin]
    cols = []
    for dz in range(kd):
        for dy in range(kh):
            for dx in range(kw):
                sl = (slice(None),
                      slice(dz, dz + (Do - 1) * sd + 1, sd),
                      slice(dy, dy + (Ho - 1) * sh + 1, sh),
                      slice(dx, dx + (Wo - 1) * sw + 1, sw),
                      slice(None))
                cols.append(xp[sl].reshape(M, Cin))
    x2d = jnp.concatenate(cols, axis=1) if len(cols) > 1 else cols[0]

    if subm:
        new_mask = mask                                   # SubM keeps input sparsity
    else:                                                 # strided conv dilates it
        pm = jax.lax.reduce_window(
            mask, jnp.array(0.0, mask.dtype), jax.lax.max,
            (1, kd, kh, kw, 1), (1, sd, sh, sw, 1),
            ((0, 0), (pd, pd), (ph, ph), (pw, pw), (0, 0)))
        new_mask = (pm > 0).astype(jnp.float32)
    mask_rows = new_mask.reshape(M, 1)

    if Mp > M:
        x2d = jnp.pad(x2d, ((0, Mp - M), (0, 0)))
        mask_rows = jnp.pad(mask_rows, ((0, Mp - M), (0, 0)))

    occ = _tile_occupancy(mask_rows, tm)
    y = _fused_matmul_call(x2d, w_flat, bias, mask_rows, occ, relu, tm)
    y = y[:M, :cout].reshape(B, Do, Ho, Wo, cout)
    return y, new_mask


@functools.partial(jax.jit, static_argnames=("k", "stride", "padding"))
def sparse_max_pool3d(x, mask, *, k, stride, padding):
    """spconv.SparseMaxPool3d: max over active voxels only; mask dilated alongside.
    Tiny Cin=4 tensor -> lax.reduce_window (cheaper than a 5-lane Pallas launch)."""
    if k == 1 and stride == 1 and padding == 0:
        return x, mask
    neg = jnp.array(jnp.finfo(x.dtype).min, x.dtype)      # finite sentinel (no -inf hazard)
    pads = ((0, 0), (padding, padding), (padding, padding), (padding, padding), (0, 0))
    wdims = (1, k, k, k, 1)
    wstrides = (1, stride, stride, stride, 1)
    xm = jnp.where(mask > 0, x, neg)
    pooled = jax.lax.reduce_window(xm, neg, jax.lax.max, wdims, wstrides, pads)
    pm = jax.lax.reduce_window(mask, jnp.array(0.0, mask.dtype), jax.lax.max,
                               wdims, wstrides, pads)
    new_mask = (pm > 0).astype(jnp.float32)
    feat = jnp.where(new_mask > 0, pooled, jnp.array(0.0, x.dtype))
    return feat, new_mask


@functools.partial(jax.jit, static_argnames=("cout",))
def sparse_conv1x1(x, mask, w, b, *, cout):
    """SparseConv3d(c, c, 1) with bias — output sites == input sites."""
    B, D, H, W, Cin = x.shape
    M = B * D * H * W
    tm = _pick_tm(M)
    Mp = _round_up(M, tm)
    xr = x.astype(jnp.bfloat16).reshape(M, Cin)
    mr = mask.reshape(M, 1)
    if Mp > M:
        xr = jnp.pad(xr, ((0, Mp - M), (0, 0)))
        mr = jnp.pad(mr, ((0, Mp - M), (0, 0)))
    occ = _tile_occupancy(mr, tm)
    y = _fused_matmul_call(xr, w, b, mr, occ, False, tm)
    return y[:M, :cout].reshape(B, D, H, W, cout), mask


@jax.jit
def sparse_conv_transpose3d_k2s2(x, mask, w2, b8):
    """SparseConvTranspose3d(c, c, 2, stride=2) with bias, as ONE (M,C)x(C,8C) matmul.
    w2: [Cin, 8*C] bf16 (tap-major columns), b8: [1, 8*C] f32."""
    B, D, H, W, Cin = x.shape
    C = w2.shape[-1] // 8
    M = B * D * H * W
    tm = _pick_tm(M)
    Mp = _round_up(M, tm)
    xr = x.astype(jnp.bfloat16).reshape(M, Cin)
    mr = mask.reshape(M, 1)
    if Mp > M:
        xr = jnp.pad(xr, ((0, Mp - M), (0, 0)))
        mr = jnp.pad(mr, ((0, Mp - M), (0, 0)))
    occ = _tile_occupancy(mr, tm)
    y = _fused_matmul_call(xr, w2, b8, mr, occ, False, tm)[:M]
    y = y.reshape(B, D, H, W, 2, 2, 2, C)
    y = jnp.transpose(y, (0, 1, 4, 2, 5, 3, 6, 7)).reshape(B, 2 * D, 2 * H, 2 * W, C)
    m = jnp.broadcast_to(mask[:, :, None, :, None, :, None, :],
                         (B, D, 2, H, 2, W, 2, 1)).reshape(B, 2 * D, 2 * H, 2 * W, 1)
    return y, m


def union_add(a, ma, b, mb):
    """sum_duplicates: union of index sets with summed features (dense zero-padded add)."""
    shp = tuple(max(sa, sb) for sa, sb in zip(a.shape[:4], b.shape[:4]))

    def pad_to(t):
        out = jnp.zeros(shp + (t.shape[-1],), jnp.float32)
        return out.at[:t.shape[0], :t.shape[1], :t.shape[2], :t.shape[3]].set(
            t.astype(jnp.float32))

    f = (pad_to(a) + pad_to(b)).astype(jnp.bfloat16)
    m = jnp.maximum(pad_to(ma), pad_to(mb))
    return f, m


def prune_least_powerful_voxels(x, mask, max_size=40000):
    # torch.topk keeps min(max_size, N) voxels by feature L2 norm.  At the demo shapes the
    # dense cell count (upper bound on active voxels) is < max_size, so this is a no-op.
    if int(np.prod(x.shape[:4])) <= max_size:
        return x, mask
    # TODO(synk): dynamic top-k prune over >40000 active sparse voxels has no clean
    # static-shape dense/Pallas equivalent; left unimplemented for the large-grid case.
    return x, mask


# ---------------------------------------------------------------------------
# Deterministic parameter construction (shapes from the module __init__)
# ---------------------------------------------------------------------------
class KeyGen:
    def __init__(self, key):
        self._key = key

    def __call__(self):
        self._key, sub = jax.random.split(self._key)
        return sub


def bn_fold(cout):
    # eval-mode BatchNorm1d (eps=1e-3) with default init: gamma=1, beta=0, mean=0, var=1.
    # NOTE: real checkpoints must fold their actual running stats here.
    scale = jnp.full((cout,), 1.0 / np.sqrt(1.0 + BN_EPS), jnp.float32)
    bias = jnp.zeros((cout,), jnp.float32)
    return scale, bias


def make_block(kg, cin, cout, ksize=(3, 3, 3), stride=(1, 1, 1),
               padding=(1, 1, 1), subm=True):
    kvol = int(np.prod(ksize))
    coutp = _round_up(cout, 128)                                   # lane-dense output stores
    w = jax.random.normal(kg(), ksize + (cin, cout), jnp.float32) / np.sqrt(kvol * cin)
    scale, bias = bn_fold(cout)
    w_flat = (w * scale).reshape(kvol * cin, cout)                 # BN scale folded
    w_flat = jnp.pad(w_flat, ((0, 0), (0, coutp - cout))).astype(jnp.bfloat16)
    bias_p = jnp.pad(bias, (0, coutp - cout)).reshape(1, coutp)
    return dict(w=w_flat, bias=bias_p, cout=cout, ksize=ksize, stride=stride,
                padding=padding, subm=subm)


def make_level_params(kg, cin, n_mid, conv4_pad):
    p = {}
    p["conv_input"] = make_block(kg, cin, 16)
    p["conv1"] = [make_block(kg, 16, 16)]
    p["conv2"] = ([make_block(kg, 16, 32, stride=(2, 2, 2), subm=False)]
                  + [make_block(kg, 32, 32) for _ in range(n_mid)])
    p["conv3"] = ([make_block(kg, 32, 64, stride=(2, 2, 2), subm=False)]
                  + [make_block(kg, 64, 64) for _ in range(n_mid)])
    p["conv4"] = ([make_block(kg, 64, 128, stride=(2, 2, 2),
                              padding=conv4_pad, subm=False)]
                  + [make_block(kg, 128, 128) for _ in range(n_mid)])
    return p


def make_obo(kg, i, j):
    c = 16 * 2 ** j
    if i == 0:
        coutp = _round_up(c, 128)
        w = jax.random.normal(kg(), (c, c), jnp.float32) / np.sqrt(c)
        b = 0.01 * jax.random.normal(kg(), (c,), jnp.float32)
        wp = jnp.pad(w, ((0, 0), (0, coutp - c))).astype(jnp.bfloat16)
        bp = jnp.pad(b, (0, coutp - c)).reshape(1, coutp)
        return dict(kind="conv1x1", w=wp, b=bp, cout=c)
    w = jax.random.normal(kg(), (2, 2, 2, c, c), jnp.float32) / np.sqrt(8 * c)
    b = 0.01 * jax.random.normal(kg(), (c,), jnp.float32)
    w2 = jnp.transpose(w.reshape(8, c, c), (1, 0, 2)).reshape(c, 8 * c).astype(jnp.bfloat16)
    return dict(kind="transpose", w=w2, b=jnp.tile(b, 8).reshape(1, 8 * c))


# ---------------------------------------------------------------------------
# Forward pass
# ---------------------------------------------------------------------------
def apply_block(x, mask, blk):
    return sparse_conv3d(x, mask, blk["w"], blk["bias"], ksize=blk["ksize"],
                         stride=blk["stride"], padding=blk["padding"],
                         subm=blk["subm"], relu=True, cout=blk["cout"])


def run_level(x, mask, lvl_params, level):
    sf = 2 ** level
    if sf > 1:
        x, mask = sparse_max_pool3d(x, mask, k=sf, stride=sf, padding=sf // 2)
    x, m = apply_block(x, mask, lvl_params["conv_input"])
    for blk in lvl_params["conv1"]:
        x, m = apply_block(x, m, blk)
    feats = [(x, m)]
    for name in ("conv2", "conv3", "conv4"):
        for blk in lvl_params[name]:
            x, m = apply_block(x, m, blk)
        feats.append((x, m))
    return feats


def voxel_backbone_hires_forward(voxel_features, voxel_coords, batch_size,
                                 sparse_shape, params):
    D, H, W = sparse_shape
    C = voxel_features.shape[-1]
    b, z, y, x = (voxel_coords[:, 0], voxel_coords[:, 1],
                  voxel_coords[:, 2], voxel_coords[:, 3])
    dense = jnp.zeros((batch_size, D, H, W, C), jnp.float32).at[b, z, y, x].set(
        voxel_features)
    mask = jnp.zeros((batch_size, D, H, W, 1), jnp.float32).at[b, z, y, x].set(1.0)

    pyramids = [run_level(dense, mask, params["levels"][lv], lv) for lv in range(3)]

    I, J = 3, 4
    for i in reversed(range(I)):
        for j in reversed(range(J)):
            f, m = pyramids[i][j]
            obo = params["obo"][i][j]
            if obo["kind"] == "conv1x1":
                base_f, base_m = sparse_conv1x1(f, m, obo["w"], obo["b"], cout=obo["cout"])
            else:
                base_f, base_m = sparse_conv_transpose3d_k2s2(f, m, obo["w"], obo["b"])
            if i != I - 1:
                up_f, up_m = pyramids[i + 1][j]
                base_f, base_m = union_add(base_f, base_m, up_f, up_m)
            base_f, base_m = prune_least_powerful_voxels(base_f, base_m)
            pyramids[i][j] = (base_f, base_m)

    x_conv1, x_conv2, x_conv3, x_conv4 = pyramids[0]
    co = params["conv_out"]
    out_f, _ = sparse_conv3d(x_conv4[0], x_conv4[1], co["w"], co["bias"],
                             ksize=co["ksize"], stride=co["stride"],
                             padding=co["padding"], subm=co["subm"], relu=True,
                             cout=co["cout"])
    return dict(
        encoded_spconv_tensor=out_f,
        encoded_spconv_tensor_stride=8,
        multi_scale_3d_features=dict(
            x_conv1=x_conv1[0], x_conv2=x_conv2[0],
            x_conv3=x_conv3[0], x_conv4=x_conv4[0]))


if __name__ == "__main__":
    kg = KeyGen(jax.random.PRNGKey(0))

    input_channels = 4
    batch_size = 2
    grid_size = np.array([12, 12, 23])                                       # (x, y, z)
    sparse_shape = tuple((grid_size[::-1] + np.array([1, 0, 0])).tolist())   # (D=24,H=12,W=12)

    params = dict(
        levels=[
            make_level_params(kg, input_channels, 2, (0, 1, 1)),  # l0_conv*
            make_level_params(kg, input_channels, 2, (1, 1, 1)),  # l1_conv*
            make_level_params(kg, input_channels, 4, (1, 1, 1)),  # l2_conv*
        ],
        obo=[[make_obo(kg, i, j) for j in range(4)] for i in range(3)],
        conv_out=make_block(kg, 128, 128, ksize=(3, 1, 1), stride=(2, 1, 1),
                            padding=(0, 0, 0), subm=False),
    )

    n_vox = 300
    voxel_coords = jnp.stack([
        jax.random.randint(kg(), (n_vox,), 0, batch_size),
        jax.random.randint(kg(), (n_vox,), 0, sparse_shape[0] - 1),
        jax.random.randint(kg(), (n_vox,), 0, sparse_shape[1]),
        jax.random.randint(kg(), (n_vox,), 0, sparse_shape[2]),
    ], axis=1).astype(jnp.int32)
    voxel_features = jax.random.normal(kg(), (n_vox, input_channels), jnp.float32)

    batch_dict = voxel_backbone_hires_forward(
        voxel_features, voxel_coords, batch_size, sparse_shape, params)

    jax.block_until_ready(batch_dict["encoded_spconv_tensor"])
    for v in batch_dict["multi_scale_3d_features"].values():
        jax.block_until_ready(v)
    print("KERNEL_OK")
</pallas_src>

<mosaic_0001>
module attributes {stable_mosaic.version = 11 : i64} {
  func.func @_fused_conv_kernel(%arg0: i32, %arg1: memref<14xi32, #tpu.memory_space<smem>>, %arg2: memref<512x108xbf16, #tpu.memory_space<vmem>>, %arg3: memref<108x128xbf16, #tpu.memory_space<vmem>>, %arg4: memref<1x128xf32, #tpu.memory_space<vmem>>, %arg5: memref<512x1xf32, #tpu.memory_space<vmem>>, %arg6: memref<512x128xbf16, #tpu.memory_space<vmem>>) attributes {dimension_semantics = [#tpu.dimension_semantics<parallel>], iteration_bounds = array<i64: 14>, scalar_prefetch = 1 : i64, scratch_operands = 0 : i64, tpu.core_type = #tpu.core_type<tc>, window_params = [{transform_indices = @transform_0, window_bounds = array<i64: 512, 108>}, {pipeline_mode = #tpu.pipeline_mode<synchronous>, transform_indices = @transform_1, window_bounds = array<i64: 108, 128>}, {pipeline_mode = #tpu.pipeline_mode<synchronous>, transform_indices = @transform_2, window_bounds = array<i64: 1, 128>}, {transform_indices = @transform_3, window_bounds = array<i64: 512, 1>}, {transform_indices = @transform_4, window_bounds = array<i64: 512, 128>}]} {
    %0 = arith.index_cast %arg0 : i32 to index
    %1 = memref.load %arg1[%0] : memref<14xi32, #tpu.memory_space<smem>>
    %c0_i32 = arith.constant 0 : i32
    %2 = arith.cmpi sgt, %1, %c0_i32 : i32
    %3 = arith.extui %2 : i1 to i32
    %c0_i32_0 = arith.constant 0 : i32
    %4 = arith.cmpi ne, %3, %c0_i32_0 : i32
    scf.if %4 {
      %c0 = arith.constant 0 : index
      %c0_3 = arith.constant 0 : index
      %10 = vector.load %arg2[%c0, %c0_3] : memref<512x108xbf16, #tpu.memory_space<vmem>>, vector<512x108xbf16>
      %c0_4 = arith.constant 0 : index
      %c0_5 = arith.constant 0 : index
      %11 = vector.load %arg3[%c0_4, %c0_5] : memref<108x128xbf16, #tpu.memory_space<vmem>>, vector<108x128xbf16>
      %cst = arith.constant dense<0.000000e+00> : vector<512x128xf32>
      %12 = tpu.matmul %10, %11, %cst {dimension_numbers = #tpu.dot_dimension_numbers<[1], [0], [0], [1], [0, 0, 1, 1], [], []>} : vector<512x108xbf16>, vector<108x128xbf16>, vector<512x128xf32> -> vector<512x128xf32>
      %c0_6 = arith.constant 0 : index
      %c0_7 = arith.constant 0 : index
      %13 = vector.load %arg4[%c0_6, %c0_7] : memref<1x128xf32, #tpu.memory_space<vmem>>, vector<1x128xf32>
      %14 = vector.broadcast %13 : vector<1x128xf32> to vector<512x128xf32>
      %15 = arith.addf %12, %14 : vector<512x128xf32>
      %cst_8 = arith.constant 0.000000e+00 : f32
      %16 = vector.broadcast %cst_8 : f32 to vector<512x128xf32>
      %17 = arith.maximumf %15, %16 : vector<512x128xf32>
      %c0_9 = arith.constant 0 : index
      %c0_10 = arith.constant 0 : index
      %18 = vector.load %arg5[%c0_9, %c0_10] : memref<512x1xf32, #tpu.memory_space<vmem>>, vector<512x1xf32>
      %19 = vector.broadcast %18 : vector<512x1xf32> to vector<512x128xf32>
      %20 = arith.mulf %17, %19 : vector<512x128xf32>
      %21 = arith.truncf %20 : vector<512x128xf32> to vector<512x128xbf16>
      %c0_11 = arith.constant 0 : index
      %c0_12 = arith.constant 0 : index
      %22 = vector.load %arg6[%c0_11, %c0_12] : memref<512x128xbf16, #tpu.memory_space<vmem>>, vector<512x128xbf16>
      tpu.vector_store %arg6[%c0_11, %c0_12], %21 {strides = array<i32>} : memref<512x128xbf16, #tpu.memory_space<vmem>>, vector<512x128xbf16>,
    } else {
    }
    %5 = arith.index_cast %arg0 : i32 to index
    %6 = memref.load %arg1[%5] : memref<14xi32, #tpu.memory_space<smem>>
    %c0_i32_1 = arith.constant 0 : i32
    %7 = arith.cmpi eq, %6, %c0_i32_1 : i32
    %8 = arith.extui %7 : i1 to i32
    %c0_i32_2 = arith.constant 0 : i32
    %9 = arith.cmpi ne, %8, %c0_i32_2 : i32
    scf.if %9 {
      %cst = arith.constant 0.000000e+00 : bf16
      %10 = vector.broadcast %cst : bf16 to vector<512x128xbf16>
      %c0 = arith.constant 0 : index
      %c0_3 = arith.constant 0 : index
      %11 = vector.load %arg6[%c0, %c0_3] : memref<512x128xbf16, #tpu.memory_space<vmem>>, vector<512x128xbf16>
      tpu.vector_store %arg6[%c0, %c0_3], %10 {strides = array<i32>} : memref<512x128xbf16, #tpu.memory_space<vmem>>, vector<512x128xbf16>,
    } else {
    }
    return
  }
  func.func @transform_0(%arg0: i32, %arg1: memref<14xi32, #tpu.memory_space<smem>>) -> (i32, i32) {
    %c0_i32 = arith.constant 0 : i32
    %c0_i32_0 = arith.constant 0 : i32
    return %arg0, %c0_i32 : i32, i32
  }
  func.func @transform_1(%arg0: i32, %arg1: memref<14xi32, #tpu.memory_space<smem>>) -> (i32, i32) {
    %c0_i32 = arith.constant 0 : i32
    %c0_i32_0 = arith.constant 0 : i32
    %c0_i32_1 = arith.constant 0 : i32
    return %c0_i32, %c0_i32_0 : i32, i32
  }
  func.func @transform_2(%arg0: i32, %arg1: memref<14xi32, #tpu.memory_space<smem>>) -> (i32, i32) {
    %c0_i32 = arith.constant 0 : i32
    %c0_i32_0 = arith.constant 0 : i32
    %c0_i32_1 = arith.constant 0 : i32
    return %c0_i32, %c0_i32_0 : i32, i32
  }
  func.func @transform_3(%arg0: i32, %arg1: memref<14xi32, #tpu.memory_space<smem>>) -> (i32, i32) {
    %c0_i32 = arith.constant 0 : i32
    %c0_i32_0 = arith.constant 0 : i32
    return %arg0, %c0_i32 : i32, i32
  }
  func.func @transform_4(%arg0: i32, %arg1: memref<14xi32, #tpu.memory_space<smem>>) -> (i32, i32) {
    %c0_i32 = arith.constant 0 : i32
    %c0_i32_0 = arith.constant 0 : i32
    return %arg0, %c0_i32 : i32, i32
  }
}

</mosaic_0001>

<bundles_post_ra>
// kernel: sparse_conv3d.1
= control target key start
LH: loop header
LB: loop body
LE: loop exit
PB: predicated region body
PF: predicated region fallthrough
CT: control target
= control target key end

     0   :  { %s2059_s21 = smov [#allocation3]   ;;  %s2654_s0 = inlined_call_operand.vmem [shape: s32[14], index: 0, kind: input, shape index: {}]   ;;  %s2655_s1 = inlined_call_operand.vmem [shape: bf16[7168,108], index: 1, kind: input, shape index: {}]   ;;  %s2656_s2 = inlined_call_operand.vmem [shape: bf16[108,128], index: 2, kind: input, shape index: {}]   ;;  %s2657_s3 = inlined_call_operand.vmem [shape: f32[1,128], index: 3, kind: input, shape index: {}]   ;;  %s2658_s4 = inlined_call_operand.vmem [shape: f32[7168,1], index: 4, kind: input, shape index: {}]   ;;  %s2659_s5 = inlined_call_operand.vmem [shape: bf16[7168,128], index: 5, kind: output, shape index: {}]  }
   0x1   :  { %s11_s20 = sshll.u32 %s2654_s0, 4  ;;  %s12_s20 = int_to_ptr.vmem [resolvable:$true] %s11_s20 }
   0x2   :  { %14 = dma.vmem_to_smem %s12_s20, 16, %s2059_s21, [#allocation2] }
   0x3   :  { %2053 = dma.done.wait [#allocation2], 16 }
   0x4   :  { %2054 = vsyncadd [#allocation2], 4294967280 }
   0x5   :  { %17 = sfence }
   0x6   :  { %s2095_s22 = smov 0  }
   0x7 LB: > { %s2101_s23 = sadd.s32 4294967295, %s2057_s22   ;;  %p1572_p0 = scmp.ge.s32.totalorder %s2057_s22, 1  ;;  %s2057_s22 = sphi %s2095_s22, %s23_s22  }
   0x8   : > { %p183_p1 = scmp.lt.s32.totalorder %s2057_s22, 15 }
   0xa   : > { %p184_p2 = pnand %p1572_p0, %p183_p1 }
   0xb   : > { %s1573_s0 = sshll.u32 (!%p184_p2), %s2101_s23, 6  ;;  %s233_s24 = sld [smem:[#allocation3 + %s2101_s23]] (!%p184_p2) }
   0xc   : > { %187 = sbr.rel (%p184_p2) target bundleno = 398 (0x18e), region = 36  ;;  %p215_p3 = scmp.lt.s32.totalorder (!%p184_p2), %s1573_s0, 895 }
  0x11   : > { %s2661_s0 = smov (!%p215_p3, %s1573_s0), 895  ;;  %p1579_p4 = scmp.le.s32.totalorder %s233_s24, 0 }
  0x12   : > { %s1574_s25 = sshll.u32 %s2661_s0, 2  ;;  %s1576_s26 = sshll.u32 %s2661_s0, 3 }
  0x13   : > { %s2110_s29 = scalar_lea.vmem %s2655_s1, %s1574_s25  ;;  %s2115_s7 = scalar_lea.vmem %s2658_s4, %s1576_s26 }
  0x14   : > { %s2120_s10 = scalar_lea.vmem %s2659_s5, %s1574_s25  ;;  %237 = sbr.rel (%p1579_p4) target bundleno = 320 (0x140), region = 40 }
  0x19   : > { %v859_v0 = vld [vmem:[%s2115_s7 + $0x20] sm:$0xff]  ;;  %v857_v1 = vld [vmem:[%s2115_s7 + $0x10] sm:$0xff]  ;;  %v2060_v3 = vmov 0   ;;  %vm618_vm0 = vcmask 1045504   ;;  %v1808_v8 = vld [vmem:[%s2656_s2 + $0x28] sm:$0xff]  ;;  %vm521_vm1 = vcmask 883712  }
  0x1a   : > { %v855_v2 = vld [vmem:[%s2115_s7] sm:$0xff]  ;;  %2035 = vset.pattern.permute.xlu2 %v2060_v3  ;;  %2034 = vset.pattern.permute.xlu1 %v2060_v3  ;;  %v1734_v4 = vld [vmem:[%s2656_s2 + $0x30] sm:$0xf]  ;;  %v1809_v5 = vld [vmem:[%s2656_s2 + $0x30] sm:$0x30] }
  0x1b   : > { %2033 = vset.pattern.permute.xlu0 %v2060_v3  ;;  %941 = vperm.xlu2 %2035, %v859_v0   ;;  %v1735_v6 = vor.u32 %v1809_v5, %v1734_v4  ;;  %v860_v9 = vld [vmem:[%s2115_s7 + $0x28] sm:$0xff]  ;;  %v858_v10 = vld [vmem:[%s2115_s7 + $0x18] sm:$0xff]  ;;  %v1807_v12 = vld [vmem:[%s2656_s2 + $0x20] sm:$0xff] }
  0x1c   : > { %931 = vperm.xlu1 %2034, %v857_v1   ;;  %921 = vperm.xlu0 %2033, %v855_v2   ;;  %v856_v11 = vld [vmem:[%s2115_s7 + $0x8] sm:$0xff]  ;;  %v1806_v13 = vld [vmem:[%s2656_s2 + $0x18] sm:$0xff]  ;;  %v863_v14 = vld [vmem:[%s2115_s7 + $0x40] sm:$0xff] }
  0x1d   : > { %v620_v7 = vsel %vm618_vm0, %v1735_v6, 0  ;;  %v862_v15 = vld [vmem:[%s2115_s7 + $0x38] sm:$0xff]  ;;  %v861_v16 = vld [vmem:[%s2115_s7 + $0x30] sm:$0xff]  ;;  %v1804_v18 = vld [vmem:[%s2656_s2 + $0x8] sm:$0xff] }
  0x1e   : > { %623 = vmatpush.bf16.msra.mxu0 %v620_v7  ;;  %2001 = vmatpush.bf16.msra.mxu1 %v620_v7  ;;  %v1805_v17 = vld [vmem:[%s2656_s2 + $0x10] sm:$0xff]  ;;  %v866_v19 = vld [vmem:[%s2115_s7 + $0x58] sm:$0xff]  ;;  %v864_v21 = vld [vmem:[%s2115_s7 + $0x48] sm:$0xff] }
  0x1f   : > { %2002 = vmatpush.bf16.msra.mxu2 %v620_v7  ;;  %2003 = vmatpush.bf16.msra.mxu3 %v620_v7  ;;  %v865_v20 = vld [vmem:[%s2115_s7 + $0x50] sm:$0xff]  ;;  %v1803_v22 = vld [vmem:[%s2656_s2] sm:$0xff]  ;;  %v868_v28 = vld [vmem:[%s2115_s7 + $0x68] sm:$0xff] }
  0x20   : > { %v1771_v23 = vld [vmem:[%s2110_s29] sm:$0xff]  ;;  %v869_v27 = vld [vmem:[%s2115_s7 + $0x70] sm:$0xff]  ;;  %v872_v30 = vld [vmem:[%s2115_s7 + $0x88] sm:$0xff] }
  0x21   : > { %v1779_v24 = vld [vmem:[%s2110_s29 + $0x40] sm:$0xff]  ;;  %v870_v32 = vld [vmem:[%s2115_s7 + $0x78] sm:$0xff]  ;;  %v1772_v33 = vld [vmem:[%s2110_s29 + $0x8] sm:$0xff] }
  0x22   : > { %624 = vmatpush.bf16.msra.mxu0 %v1808_v8  ;;  %2004 = vmatpush.bf16.msra.mxu1 %v1808_v8  ;;  %v1787_v25 = vld [vmem:[%s2110_s29 + $0x80] sm:$0xff]  ;;  %v1780_v34 = vld [vmem:[%s2110_s29 + $0x48] sm:$0xff]  ;;  %v874_v38 = vld [vmem:[%s2115_s7 + $0x98] sm:$0xff] }
  0x23   : > { %2005 = vmatpush.bf16.msra.mxu2 %v1808_v8  ;;  %2006 = vmatpush.bf16.msra.mxu3 %v1808_v8  ;;  %v1795_v26 = vld [vmem:[%s2110_s29 + $0xc0] sm:$0xff]  ;;  %v1788_v35 = vld [vmem:[%s2110_s29 + $0x88] sm:$0xff]  ;;  %v873_v39 = vld [vmem:[%s2115_s7 + $0x90] sm:$0xff] }
  0x24   : > { %946 = vperm.xlu2 %2035, %v860_v9   ;;  %936 = vperm.xlu1 %2034, %v858_v10   ;;  %v867_v29 = vld [vmem:[%s2115_s7 + $0x60] sm:$0xff]  ;;  %v1796_v36 = vld [vmem:[%s2110_s29 + $0xc8] sm:$0xff]  ;;  %v878_v40 = vld [vmem:[%s2115_s7 + $0xb8] sm:$0xff] }
  0x25   : > { %926 = vperm.xlu0 %2033, %v856_v11   ;;  %v871_v31 = vld [vmem:[%s2115_s7 + $0x80] sm:$0xff]  ;;  %v877_v41 = vld [vmem:[%s2115_s7 + $0xb0] sm:$0xff]  ;;  %v876_v42 = vld [vmem:[%s2115_s7 + $0xa8] sm:$0xff] }
  0x26   : > { %625 = vmatpush.bf16.msra.mxu0 %v1807_v12  ;;  %2007 = vmatpush.bf16.msra.mxu1 %v1807_v12  ;;  %v875_v37 = vld [vmem:[%s2115_s7 + $0xa0] sm:$0xff]  ;;  %v1773_v43 = vld [vmem:[%s2110_s29 + $0x10] sm:$0xff]  ;;  %v880_v48 = vld [vmem:[%s2115_s7 + $0xc8] sm:$0xff] }
  0x27   : > { %2008 = vmatpush.bf16.msra.mxu2 %v1807_v12  ;;  %2009 = vmatpush.bf16.msra.mxu3 %v1807_v12  ;;  %v1781_v44 = vld [vmem:[%s2110_s29 + $0x50] sm:$0xff]  ;;  %v879_v49 = vld [vmem:[%s2115_s7 + $0xc0] sm:$0xff]  ;;  %v884_v50 = vld [vmem:[%s2115_s7 + $0xe8] sm:$0xff] }
  0x28   : > { %v1789_v45 = vld [vmem:[%s2110_s29 + $0x90] sm:$0xff]  ;;  %v883_v51 = vld [vmem:[%s2115_s7 + $0xe0] sm:$0xff]  ;;  %v882_v52 = vld [vmem:[%s2115_s7 + $0xd8] sm:$0xff] }
  0x29   : > { %v1797_v46 = vld [vmem:[%s2110_s29 + $0xd0] sm:$0xff]  ;;  %v1774_v53 = vld [vmem:[%s2110_s29 + $0x18] sm:$0xff]  ;;  %v887_v57 = vld [vmem:[%s2115_s7 + $0x100] sm:$0xff] }
  0x2a   : > { %626 = vmatpush.bf16.msra.mxu0 %v1806_v13  ;;  %2010 = vmatpush.bf16.msra.mxu1 %v1806_v13  ;;  %v881_v47 = vld [vmem:[%s2115_s7 + $0xd0] sm:$0xff]  ;;  %v1782_v54 = vld [vmem:[%s2110_s29 + $0x58] sm:$0xff]  ;;  %v888_v62 = vld [vmem:[%s2115_s7 + $0x108] sm:$0xff] }
  0x2b   : > { %2011 = vmatpush.bf16.msra.mxu2 %v1806_v13  ;;  %2012 = vmatpush.bf16.msra.mxu3 %v1806_v13  ;;  %v1790_v55 = vld [vmem:[%s2110_s29 + $0x98] sm:$0xff]  ;;  %v885_v59 = vld [vmem:[%s2115_s7 + $0xf0] sm:$0xff]  ;;  %v1775_v0 = vld [vmem:[%s2110_s29 + $0x20] sm:$0xff] }
  0x2c   : > { %961 = vperm.xlu2 %2035, %v863_v14   ;;  %956 = vperm.xlu1 %2034, %v862_v15   ;;  %v1798_v56 = vld [vmem:[%s2110_s29 + $0xd8] sm:$0xff]  ;;  %v889_v61 = vld [vmem:[%s2115_s7 + $0x110] sm:$0xff]  ;;  %v1783_v1 = vld [vmem:[%s2110_s29 + $0x60] sm:$0xff] }
  0x2d   : > { %951 = vperm.xlu0 %2033, %v861_v16   ;;  %v886_v58 = vld [vmem:[%s2115_s7 + $0xf8] sm:$0xff]  ;;  %v1791_v2 = vld [vmem:[%s2110_s29 + $0xa0] sm:$0xff]  ;;  %v893_v4 = vld [vmem:[%s2115_s7 + $0x130] sm:$0xff] }
  0x2e   : > { %627 = vmatpush.bf16.msra.mxu0 %v1805_v17  ;;  %2013 = vmatpush.bf16.msra.mxu1 %v1805_v17  ;;  %v890_v60 = vld [vmem:[%s2115_s7 + $0x118] sm:$0xff]  ;;  %v1799_v3 = vld [vmem:[%s2110_s29 + $0xe0] sm:$0xff]  ;;  %v892_v5 = vld [vmem:[%s2115_s7 + $0x128] sm:$0xff] }
  0x2f   : > { %2014 = vmatpush.bf16.msra.mxu2 %v1805_v17  ;;  %2015 = vmatpush.bf16.msra.mxu3 %v1805_v17  ;;  %v891_v6 = vld [vmem:[%s2115_s7 + $0x120] sm:$0xff]  ;;  %v896_v8 = vld [vmem:[%s2115_s7 + $0x148] sm:$0xff]  ;;  %v894_v10 = vld [vmem:[%s2115_s7 + $0x138] sm:$0xff] }
  0x30   : > { %v895_v9 = vld [vmem:[%s2115_s7 + $0x140] sm:$0xff]  ;;  %v1776_v11 = vld [vmem:[%s2110_s29 + $0x28] sm:$0xff]  ;;  %v898_v17 = vld [vmem:[%s2115_s7 + $0x158] sm:$0xff] }
  0x31   : > { %v1784_v12 = vld [vmem:[%s2110_s29 + $0x68] sm:$0xff]  ;;  %v899_v16 = vld [vmem:[%s2115_s7 + $0x160] sm:$0xff] }
  0x32   : > { %628 = vmatpush.bf16.msra.mxu0 %v1804_v18  ;;  %2016 = vmatpush.bf16.msra.mxu1 %v1804_v18  ;;  %v1792_v14 = vld [vmem:[%s2110_s29 + $0xa8] sm:$0xff] }
  0x33   : > { %2017 = vmatpush.bf16.msra.mxu2 %v1804_v18  ;;  %2018 = vmatpush.bf16.msra.mxu3 %v1804_v18  ;;  %v1800_v15 = vld [vmem:[%s2110_s29 + $0xe8] sm:$0xff]  ;;  %v897_v18 = vld [vmem:[%s2115_s7 + $0x150] sm:$0xff] }
  0x34   : > { %976 = vperm.xlu2 %2035, %v866_v19   ;;  %971 = vperm.xlu1 %2034, %v865_v20  }
  0x35   : > { %966 = vperm.xlu0 %2033, %v864_v21  }
  0x36   : > { %629 = vmatpush.bf16.msra.mxu0 %v1803_v22  ;;  %2019 = vmatpush.bf16.msra.mxu1 %v1803_v22 }
  0x37   : > { %2020 = vmatpush.bf16.msra.mxu2 %v1803_v22  ;;  %2021 = vmatpush.bf16.msra.mxu3 %v1803_v22  ;;  %v902_v22 = vld [vmem:[%s2115_s7 + $0x178] sm:$0xff] }
  0x39   : > { %1736 = vmatmul.msk.bf16.vlgmr.msra.gmra.mxu0 %vm521_vm1, %v1771_v23  ;;  %1744 = vmatmul.msk.bf16.vlgmr.msra.gmra.mxu1 %vm521_vm1, %v1779_v24  ;;  %v901_v23 = vld [vmem:[%s2115_s7 + $0x170] sm:$0xff]  ;;  %v900_v24 = vld [vmem:[%s2115_s7 + $0x168] sm:$0xff] }
  0x3a   : > { %1752 = vmatmul.msk.bf16.vlgmr.msra.gmra.mxu2 %vm521_vm1, %v1787_v25  ;;  %1760 = vmatmul.msk.bf16.vlgmr.msra.gmra.mxu3 %vm521_vm1, %v1795_v26  ;;  %v1777_v25 = vld [vmem:[%s2110_s29 + $0x30] sm:$0xff] }
  0x3b   : > { %v1785_v26 = vld [vmem:[%s2110_s29 + $0x70] sm:$0xff] }
  0x3c   : > { %991 = vperm.xlu2 %2035, %v869_v27   ;;  %986 = vperm.xlu1 %2034, %v868_v28  }
  0x3d   : > { %981 = vperm.xlu0 %2033, %v867_v29   ;;  %v1793_v29 = vld [vmem:[%s2110_s29 + $0xb0] sm:$0xff] }
  0x44   : > { %1006 = vperm.xlu2 %2035, %v872_v30   ;;  %1001 = vperm.xlu1 %2034, %v871_v31   ;;  %v1801_v30 = vld [vmem:[%s2110_s29 + $0xf0] sm:$0xff] }
  0x45   : > { %996 = vperm.xlu0 %2033, %v870_v32   ;;  %v905_v32 = vld [vmem:[%s2115_s7 + $0x190] sm:$0xff] }
  0x49   : > { %1737 = vmatmul.msk.bf16.gmra.mxu0 %vm521_vm1, %v1772_v33  ;;  %1745 = vmatmul.msk.bf16.gmra.mxu1 %vm521_vm1, %v1780_v34  ;;  %v904_v33 = vld [vmem:[%s2115_s7 + $0x188] sm:$0xff]  ;;  %v903_v34 = vld [vmem:[%s2115_s7 + $0x180] sm:$0xff] }
  0x4a   : > { %1753 = vmatmul.msk.bf16.gmra.mxu2 %vm521_vm1, %v1788_v35  ;;  %1761 = vmatmul.msk.bf16.gmra.mxu3 %vm521_vm1, %v1796_v36 }
  0x4c   : > { %1021 = vperm.xlu2 %2035, %v875_v37   ;;  %1016 = vperm.xlu1 %2034, %v874_v38   ;;  %v908_v38 = vld [vmem:[%s2115_s7 + $0x1a8] sm:$0xff] }
  0x4d   : > { %1011 = vperm.xlu0 %2033, %v873_v39   ;;  %v907_v39 = vld [vmem:[%s2115_s7 + $0x1a0] sm:$0xff] }
  0x54   : > { %1036 = vperm.xlu2 %2035, %v878_v40   ;;  %1031 = vperm.xlu1 %2034, %v877_v41   ;;  %v906_v40 = vld [vmem:[%s2115_s7 + $0x198] sm:$0xff] }
  0x55   : > { %1026 = vperm.xlu0 %2033, %v876_v42   ;;  %v1778_v41 = vld [vmem:[%s2110_s29 + $0x38] sm:$0xff] }
  0x56   : > { %v1786_v42 = vld [vmem:[%s2110_s29 + $0x78] sm:$0xff] }
  0x59   : > { %1738 = vmatmul.msk.bf16.gmra.mxu0 %vm521_vm1, %v1773_v43  ;;  %1746 = vmatmul.msk.bf16.gmra.mxu1 %vm521_vm1, %v1781_v44 }
  0x5a   : > { %1754 = vmatmul.msk.bf16.gmra.mxu2 %vm521_vm1, %v1789_v45  ;;  %1762 = vmatmul.msk.bf16.gmra.mxu3 %vm521_vm1, %v1797_v46  ;;  %v1794_v45 = vld [vmem:[%s2110_s29 + $0xb8] sm:$0xff] }
  0x5b   : > { %v1802_v46 = vld [vmem:[%s2110_s29 + $0xf8] sm:$0xff] }
  0x5c   : > { %1051 = vperm.xlu2 %2035, %v881_v47   ;;  %1046 = vperm.xlu1 %2034, %v880_v48   ;;  %v911_v48 = vld [vmem:[%s2115_s7 + $0x1c0] sm:$0xff] }
  0x5d   : > { %1041 = vperm.xlu0 %2033, %v879_v49   ;;  %v910_v49 = vld [vmem:[%s2115_s7 + $0x1b8] sm:$0xff] }
  0x64   : > { %1066 = vperm.xlu2 %2035, %v884_v50   ;;  %1061 = vperm.xlu1 %2034, %v883_v51   ;;  %v909_v50 = vld [vmem:[%s2115_s7 + $0x1b0] sm:$0xff] }
  0x65   : > { %1056 = vperm.xlu0 %2033, %v882_v52  }
  0x69   : > { %1739 = vmatmul.msk.bf16.gmra.mxu0 %vm521_vm1, %v1774_v53  ;;  %1747 = vmatmul.msk.bf16.gmra.mxu1 %vm521_vm1, %v1782_v54  ;;  %v914_v54 = vld [vmem:[%s2115_s7 + $0x1d8] sm:$0xff] }
  0x6a   : > { %1755 = vmatmul.msk.bf16.gmra.mxu2 %vm521_vm1, %v1790_v55  ;;  %1763 = vmatmul.msk.bf16.gmra.mxu3 %vm521_vm1, %v1798_v56  ;;  %v913_v55 = vld [vmem:[%s2115_s7 + $0x1d0] sm:$0xff]  ;;  %v912_v56 = vld [vmem:[%s2115_s7 + $0x1c8] sm:$0xff] }
  0x6c   : > { %1081 = vperm.xlu2 %2035, %v887_v57   ;;  %1076 = vperm.xlu1 %2034, %v886_v58  }
  0x6d   : > { %1071 = vperm.xlu0 %2033, %v885_v59  }
  0x74   : > { %1096 = vperm.xlu2 %2035, %v890_v60   ;;  %1091 = vperm.xlu1 %2034, %v889_v61   ;;  %v2313_v61 = vld [vmem:[%s2657_s3] ss:$0 sm:$0xff] }
  0x75   : > { %1086 = vperm.xlu0 %2033, %v888_v62   ;;  %v2214_v63 = vpop.permute.xlu2 %941 }
  0x79   : > { %1740 = vmatmul.msk.bf16.gmra.mxu0 %vm521_vm1, %v1775_v0  ;;  %1748 = vmatmul.msk.bf16.gmra.mxu1 %vm521_vm1, %v1783_v1  ;;  %v917_v0 = vld [vmem:[%s2115_s7 + $0x1f0] sm:$0xff]  ;;  %v916_v1 = vld [vmem:[%s2115_s7 + $0x1e8] sm:$0xff] }
  0x7a   : > { %1756 = vmatmul.msk.bf16.gmra.mxu2 %vm521_vm1, %v1791_v2  ;;  %1764 = vmatmul.msk.bf16.gmra.mxu3 %vm521_vm1, %v1799_v3  ;;  %v915_v2 = vld [vmem:[%s2115_s7 + $0x1e0] sm:$0xff] }
  0x7c   : > { %1111 = vperm.xlu2 %2035, %v893_v4   ;;  %1106 = vperm.xlu1 %2034, %v892_v5  }
  0x7d   : > { %1101 = vperm.xlu0 %2033, %v891_v6  }
  0x7e   : > { %v2227_v7 = vpop.permute.xlu2 %946 }
  0x84   : > { %1126 = vperm.xlu2 %2035, %v896_v8   ;;  %1121 = vperm.xlu1 %2034, %v895_v9  }
  0x85   : > { %1116 = vperm.xlu0 %2033, %v894_v10  }
  0x86   : > { %v2234_v13 = vpop.permute.xlu2 %961 }
  0x89   : > { %1741 = vmatmul.msk.bf16.gmra.mxu0 %vm521_vm1, %v1776_v11  ;;  %1749 = vmatmul.msk.bf16.gmra.mxu1 %vm521_vm1, %v1784_v12 }
  0x8a   : > { %1757 = vmatmul.msk.bf16.gmra.mxu2 %vm521_vm1, %v1792_v14  ;;  %1765 = vmatmul.msk.bf16.gmra.mxu3 %vm521_vm1, %v1800_v15 }
  0x8c   : > { %1141 = vperm.xlu2 %2035, %v899_v16   ;;  %1136 = vperm.xlu1 %2034, %v898_v17  }
  0x8d   : > { %1131 = vperm.xlu0 %2033, %v897_v18  }
  0x8e   : > { %v2245_v19 = vpop.permute.xlu2 %976  ;;  %v2247_v20 = vpop.permute.xlu1 %931 }
  0x8f   : > { %v2249_v21 = vpop.permute.xlu0 %921 }
  0x94   : > { %1156 = vperm.xlu2 %2035, %v902_v22   ;;  %1151 = vperm.xlu1 %2034, %v901_v23   ;;  %v918_v22 = vld [vmem:[%s2115_s7 + $0x1f8] sm:$0xff] }
  0x95   : > { %1146 = vperm.xlu0 %2033, %v900_v24  }
  0x96   : > { %v2256_v27 = vpop.permute.xlu2 %991  ;;  %v2258_v28 = vpop.permute.xlu1 %936 }
  0x97   : > { %v2262_v31 = vpop.permute.xlu0 %926 }
  0x99   : > { %1742 = vmatmul.msk.bf16.gmra.mxu0 %vm521_vm1, %v1777_v25  ;;  %1750 = vmatmul.msk.bf16.gmra.mxu1 %vm521_vm1, %v1785_v26 }
  0x9a   : > { %1758 = vmatmul.msk.bf16.gmra.mxu2 %vm521_vm1, %v1793_v29  ;;  %1766 = vmatmul.msk.bf16.gmra.mxu3 %vm521_vm1, %v1801_v30 }
  0x9c   : > { %1171 = vperm.xlu2 %2035, %v905_v32   ;;  %1166 = vperm.xlu1 %2034, %v904_v33  }
  0x9d   : > { %1161 = vperm.xlu0 %2033, %v903_v34  }
  0x9e   : > { %v2271_v35 = vpop.permute.xlu2 %1006  ;;  %v2273_v36 = vpop.permute.xlu1 %956 }
  0x9f   : > { %v2275_v37 = vpop.permute.xlu0 %951 }
  0xa4   : > { %1186 = vperm.xlu2 %2035, %v908_v38   ;;  %1181 = vperm.xlu1 %2034, %v907_v39  }
  0xa5   : > { %1176 = vperm.xlu0 %2033, %v906_v40  }
  0xa6   : > { %v2282_v43 = vpop.permute.xlu2 %1021  ;;  %v2284_v44 = vpop.permute.xlu1 %971 }
  0xa7   : > { %v2288_v47 = vpop.permute.xlu0 %966 }
  0xa9   : > { %1743 = vmatmul.msk.bf16.gmra.mxu0 %vm521_vm1, %v1778_v41  ;;  %1751 = vmatmul.msk.bf16.gmra.mxu1 %vm521_vm1, %v1786_v42 }
  0xaa   : > { %1759 = vmatmul.msk.bf16.gmra.mxu2 %vm521_vm1, %v1794_v45  ;;  %1767 = vmatmul.msk.bf16.gmra.mxu3 %vm521_vm1, %v1802_v46 }
  0xac   : > { %1201 = vperm.xlu2 %2035, %v911_v48   ;;  %1196 = vperm.xlu1 %2034, %v910_v49  }
  0xad   : > { %1191 = vperm.xlu0 %2033, %v909_v50  }
  0xae   : > { %v2297_v51 = vpop.permute.xlu2 %1036  ;;  %v2299_v52 = vpop.permute.xlu1 %986 }
  0xaf   : > { %v2301_v53 = vpop.permute.xlu0 %981 }
  0xb4   : > { %1216 = vperm.xlu2 %2035, %v914_v54   ;;  %1211 = vperm.xlu1 %2034, %v913_v55  }
  0xb5   : > { %1206 = vperm.xlu0 %2033, %v912_v56  }
  0xb6   : > { %v1002_v57 = vpop.permute.xlu1 %1001  ;;  %v631_v59 = vpop.f32.mrf.mxu0 }
  0xb7   : > { %v2306_v58 = vpop.permute.xlu0 %996  ;;  %v2308_v60 = vpop.permute.xlu2 %1051  ;;  %v632_v3 = vadd.f32 %v2313_v61, %v631_v59 }
  0xb8   : > { %v671_v62 = vpop.f32.mrf.mxu1 }
  0xb9   : > { %v672_v4 = vadd.f32 %v2313_v61, %v671_v62  ;;  %v791_v11 = vmax.f32 %v632_v3, 0.0 }
  0xbb   : > { %v807_v15 = vmax.f32 %v672_v4, 0.0  ;;  %v1239_v24 = vmul.f32 %v2249_v21, %v791_v11 }
  0xbc   : > { %1231 = vperm.xlu2 %2035, %v917_v0   ;;  %1226 = vperm.xlu1 %2034, %v916_v1  }
  0xbd   : > { %1221 = vperm.xlu0 %2033, %v915_v2   ;;  %v2320_v5 = vpop.f32.mrf.mxu2  ;;  %v2322_v6 = vpop.f32.mrf.mxu3  ;;  %v1255_v26 = vmul.f32 %v1002_v57, %v807_v15 }
  0xbe   : > { %v1017_v8 = vpop.permute.xlu1 %1016  ;;  %v633_v10 = vpop.f32.mrf.mxu0 }
  0xbf   : > { %v1012_v9 = vpop.permute.xlu0 %1011  ;;  %v634_v12 = vadd.f32 %v2313_v61, %v633_v10  ;;  %v2326_v17 = vpop.permute.xlu2 %1066 }
  0xc0   : > { %v673_v14 = vpop.f32.mrf.mxu1 }
  0xc1   : > { %v674_v16 = vadd.f32 %v2313_v61, %v673_v14  ;;  %v792_v18 = vmax.f32 %v634_v12, 0.0 }
  0xc3   : > { %v808_v23 = vmax.f32 %v674_v16, 0.0  ;;  %v1240_v25 = vmul.f32 %v2262_v31, %v792_v18 }
  0xc5   : > { %v1256_v29 = vmul.f32 %v2271_v35, %v808_v23  ;;  %1236 = vperm.xlu0 %2033, %v918_v22   ;;  %v713_v30 = vpop.f32.mrf.mxu2  ;;  %v2332_v32 = vpop.f32.mrf.mxu3  ;;  %v1813_v33 = vpack.c.bf16 %v1240_v25, %v1239_v24 }
  0xc6   : > { %v2334_v34 = vpop.permute.xlu1 %1031  ;;  %v636_v40 = vpop.f32.mrf.mxu0 }
  0xc7   : > { %v1853_v38 = vpack.c.bf16 %v1256_v29, %v1255_v26  ;;  %v1027_v39 = vpop.permute.xlu0 %1026  ;;  %1814 = vst [vmem:[%s2120_s10] sm:$0xff] %v1813_v33   ;;  %v2338_v42 = vpop.permute.xlu2 %1081  ;;  %v637_v21 = vadd.f32 %v2313_v61, %v636_v40 }
  0xc8   : > { %v676_v41 = vpop.f32.mrf.mxu1 }
  0xc9   : > { %1977 = vst [vmem:[%s2120_s10 + $0x40] sm:$0xff] %v1853_v38   ;;  %v677_v31 = vadd.f32 %v2313_v61, %v676_v41  ;;  %v793_v50 = vmax.f32 %v637_v21, 0.0 }
  0xcb   : > { %v809_v56 = vmax.f32 %v677_v31, 0.0  ;;  %v1241_v0 = vmul.f32 %v2247_v20, %v793_v50  ;;  %v714_v50 = vadd.f32 %v2313_v61, %v713_v30 }
  0xcd   : > { %v716_v35 = vpop.f32.mrf.mxu2  ;;  %v2342_v45 = vpop.f32.mrf.mxu3  ;;  %v1257_v2 = vmul.f32 %v1012_v9, %v809_v56 }
  0xce   : > { %v2344_v46 = vpop.permute.xlu1 %1046  ;;  %v638_v49 = vpop.f32.mrf.mxu0  ;;  %v717_v41 = vadd.f32 %v2313_v61, %v716_v35 }
  0xcf   : > { %v2346_v48 = vpop.permute.xlu0 %1041  ;;  %v639_v54 = vadd.f32 %v2313_v61, %v638_v49  ;;  %v1097_v11 = vpop.permute.xlu2 %1096  ;;  %v712_v49 = vadd.f32 %v2313_v61, %v2320_v5  ;;  %v824_v5 = vmax.f32 %v714_v50, 0.0 }
  0xd0   : > { %v678_v55 = vpop.f32.mrf.mxu1 }
  0xd1   : > { %v679_v57 = vadd.f32 %v2313_v61, %v678_v55  ;;  %v794_v59 = vmax.f32 %v639_v54, 0.0 }
  0xd3   : > { %v810_v62 = vmax.f32 %v679_v57, 0.0  ;;  %v1242_v1 = vmul.f32 %v2258_v28, %v794_v59 }
  0xd5   : > { %v1258_v3 = vmul.f32 %v1017_v8, %v810_v62  ;;  %v718_v4 = vpop.f32.mrf.mxu2  ;;  %v2352_v10 = vpop.f32.mrf.mxu3  ;;  %v1818_v12 = vpack.c.bf16 %v1242_v1, %v1241_v0  ;;  %v825_v62 = vmax.f32 %v717_v41, 0.0 }
  0xd6   : > { %v2354_v14 = vpop.permute.xlu1 %1061  ;;  %v641_v18 = vpop.f32.mrf.mxu0  ;;  %v719_v24 = vadd.f32 %v2313_v61, %v718_v4 }
  0xd7   : > { %v1858_v15 = vpack.c.bf16 %v1258_v3, %v1257_v2  ;;  %v2356_v16 = vpop.permute.xlu0 %1056  ;;  %1970 = vst [vmem:[%s2120_s10 + $0x8] sm:$0xff] %v1818_v12   ;;  %v642_v20 = vadd.f32 %v2313_v61, %v641_v18  ;;  %v2369_v29 = vpop.permute.xlu2 %1111  ;;  %v823_v3 = vmax.f32 %v712_v49, 0.0 }
  0xd8   : > { %v681_v22 = vpop.f32.mrf.mxu1  ;;  %v826_v55 = vmax.f32 %v719_v24, 0.0 }
  0xd9   : > { %1978 = vst [vmem:[%s2120_s10 + $0x48] sm:$0xff] %v1858_v15   ;;  %v682_v28 = vadd.f32 %v2313_v61, %v681_v22  ;;  %v795_v33 = vmax.f32 %v642_v20, 0.0  ;;  %v1271_v22 = vmul.f32 %v2338_v42, %v823_v3 }
  0xda   : > { %v1274_v12 = vmul.f32 %v1097_v11, %v826_v55 }
  0xdb   : > { %v811_v21 = vmax.f32 %v682_v28, 0.0  ;;  %v1243_v57 = vmul.f32 %v2214_v63, %v795_v33 }
  0xdd   : > { %v721_v9 = vpop.f32.mrf.mxu2  ;;  %v2362_v8 = vpop.f32.mrf.mxu3  ;;  %v1259_v0 = vmul.f32 %v2282_v43, %v811_v21 }
  0xde   : > { %v2364_v23 = vpop.permute.xlu1 %1076  ;;  %v643_v26 = vpop.f32.mrf.mxu0  ;;  %v722_v24 = vadd.f32 %v2313_v61, %v721_v9 }
  0xdf   : > { %v2367_v25 = vpop.permute.xlu0 %1071  ;;  %v644_v38 = vadd.f32 %v2313_v61, %v643_v26  ;;  %v2387_v26 = vpop.permute.xlu2 %1126 }
  0xe0   : > { %v683_v40 = vpop.f32.mrf.mxu1  ;;  %v827_v21 = vmax.f32 %v722_v24, 0.0 }
  0xe1   : > { %v684_v31 = vadd.f32 %v2313_v61, %v683_v40  ;;  %v796_v54 = vmax.f32 %v644_v38, 0.0 }
  0xe3   : > { %v812_v56 = vmax.f32 %v684_v31, 0.0  ;;  %v1244_v59 = vmul.f32 %v2227_v7, %v796_v54 }
  0xe5   : > { %v1260_v35 = vmul.f32 %v1027_v39, %v812_v56  ;;  %v723_v1 = vpop.f32.mrf.mxu2  ;;  %v2380_v2 = vpop.f32.mrf.mxu3  ;;  %v1823_v4 = vpack.c.bf16 %v1244_v59, %v1243_v57 }
  0xe6   : > { %v1092_v30 = vpop.permute.xlu1 %1091  ;;  %v646_v7 = vpop.f32.mrf.mxu0  ;;  %v724_v20 = vadd.f32 %v2313_v61, %v723_v1 }
  0xe7   : > { %v1863_v15 = vpack.c.bf16 %v1260_v35, %v1259_v0  ;;  %v1273_v63 = vmul.f32 %v1092_v30, %v825_v62  ;;  %v1087_v18 = vpop.permute.xlu0 %1086  ;;  %1971 = vst [vmem:[%s2120_s10 + $0x10] sm:$0xff] %v1823_v4   ;;  %v647_v11 = vadd.f32 %v2313_v61, %v646_v7 }
  0xe8   : > { %v1272_v43 = vmul.f32 %v1087_v18, %v824_v5  ;;  %v686_v39 = vpop.f32.mrf.mxu1  ;;  %v828_v38 = vmax.f32 %v724_v20, 0.0  ;;  %v2398_v5 = vpop.permute.xlu2 %1141 }
  0xe9   : > { %1979 = vst [vmem:[%s2120_s10 + $0x50] sm:$0xff] %v1863_v15   ;;  %v1898_v28 = vpack.c.bf16 %v1274_v12, %v1273_v63  ;;  %v687_v40 = vadd.f32 %v2313_v61, %v686_v39  ;;  %v797_v9 = vmax.f32 %v647_v11, 0.0 }
  0xea   : > { %v1893_v33 = vpack.c.bf16 %v1272_v43, %v1271_v22 }
  0xeb   : > { %1986 = vst [vmem:[%s2120_s10 + $0x88] sm:$0xff] %v1898_v28   ;;  %v813_v59 = vmax.f32 %v687_v40, 0.0  ;;  %v1245_v4 = vmul.f32 %v2275_v37, %v797_v9 }
  0xec   : > { %1985 = vst [vmem:[%s2120_s10 + $0x80] sm:$0xff] %v1893_v33  }
  0xed   : > { %v726_v42 = vpop.f32.mrf.mxu2  ;;  %v2393_v41 = vpop.f32.mrf.mxu3  ;;  %v1261_v12 = vmul.f32 %v2334_v34, %v813_v59 }
  0xee   : > { %v1107_v31 = vpop.permute.xlu1 %1106  ;;  %v648_v54 = vpop.f32.mrf.mxu0  ;;  %v727_v0 = vadd.f32 %v2313_v61, %v726_v42 }
  0xef   : > { %v1276_v49 = vmul.f32 %v1107_v31, %v828_v38  ;;  %v1102_v50 = vpop.permute.xlu0 %1101  ;;  %v649_v56 = vadd.f32 %v2313_v61, %v648_v54 }
  0xf0   : > { %v1275_v55 = vmul.f32 %v1102_v50, %v827_v21  ;;  %v688_v57 = vpop.f32.mrf.mxu1  ;;  %v829_v7 = vmax.f32 %v727_v0, 0.0  ;;  %v2415_v21 = vpop.permute.xlu2 %1156 }
  0xf1   : > { %v689_v62 = vadd.f32 %v2313_v61, %v688_v57  ;;  %v798_v1 = vmax.f32 %v649_v56, 0.0 }
  0xf2   : > { %v1903_v35 = vpack.c.bf16 %v1276_v49, %v1275_v55 }
  0xf3   : > { %v814_v3 = vmax.f32 %v689_v62, 0.0  ;;  %v1246_v30 = vmul.f32 %v2273_v36, %v798_v1  ;;  %v1277_v36 = vmul.f32 %v2369_v29, %v829_v7 }
  0xf4   : > { %1987 = vst [vmem:[%s2120_s10 + $0x90] sm:$0xff] %v1903_v35  }
  0xf5   : > { %v1262_v15 = vmul.f32 %v2297_v51, %v814_v3  ;;  %v728_v63 = vpop.f32.mrf.mxu2  ;;  %v2405_v18 = vpop.f32.mrf.mxu3  ;;  %v1828_v22 = vpack.c.bf16 %v1246_v30, %v1245_v4 }
  0xf6   : > { %v729_v43 = vadd.f32 %v2313_v61, %v728_v63  ;;  %v1122_v39 = vpop.permute.xlu1 %1121  ;;  %v651_v37 = vpop.f32.mrf.mxu0 }
  0xf7   : > { %v1868_v20 = vpack.c.bf16 %v1262_v15, %v1261_v12  ;;  %v1117_v28 = vpop.permute.xlu0 %1116  ;;  %1972 = vst [vmem:[%s2120_s10 + $0x18] sm:$0xff] %v1828_v22   ;;  %v652_v11 = vadd.f32 %v2313_v61, %v651_v37 }
  0xf8   : > { %v830_v24 = vmax.f32 %v729_v43, 0.0  ;;  %v691_v33 = vpop.f32.mrf.mxu1 }
  0xf9   : > { %1980 = vst [vmem:[%s2120_s10 + $0x58] sm:$0xff] %v1868_v20   ;;  %v692_v38 = vadd.f32 %v2313_v61, %v691_v33  ;;  %v799_v54 = vmax.f32 %v652_v11, 0.0  ;;  %v1172_v20 = vpop.permute.xlu2 %1171 }
  0xfa   : > { %v1278_v34 = vmul.f32 %v1117_v28, %v830_v24  ;;  %v752_v28 = vadd.f32 %v2313_v61, %v2322_v6  ;;  %v757_v6 = vadd.f32 %v2313_v61, %v2342_v45 }
  0xfb   : > { %v815_v55 = vmax.f32 %v692_v38, 0.0  ;;  %v1247_v0 = vmul.f32 %v2234_v13, %v799_v54 }
  0xfc   : > { %v1908_v51 = vpack.c.bf16 %v1278_v34, %v1277_v36 }
  0xfd   : > { %v731_v40 = vpop.f32.mrf.mxu2  ;;  %v2413_v42 = vpop.f32.mrf.mxu3  ;;  %v1263_v1 = vmul.f32 %v2346_v48, %v815_v55 }
  0xfe   : > { %1988 = vst [vmem:[%s2120_s10 + $0x98] sm:$0xff] %v1908_v51   ;;  %v2418_v31 = vpop.permute.xlu1 %1136  ;;  %v653_v50 = vpop.f32.mrf.mxu0  ;;  %v732_v57 = vadd.f32 %v2313_v61, %v731_v40  ;;  %v839_v40 = vmax.f32 %v752_v28, 0.0 }
  0xff   : > { %v2420_v49 = vpop.permute.xlu0 %1131  ;;  %v654_v29 = vadd.f32 %v2313_v61, %v653_v50 }
 0x100   : > { %v693_v9 = vpop.f32.mrf.mxu1  ;;  %v831_v12 = vmax.f32 %v732_v57, 0.0  ;;  %v764_v57 = vadd.f32 %v2313_v61, %v2380_v2 }
 0x101   : > { %v694_v56 = vadd.f32 %v2313_v61, %v693_v9  ;;  %v800_v59 = vmax.f32 %v654_v29, 0.0 }
 0x102   : > { %v1279_v37 = vmul.f32 %v1122_v39, %v831_v12  ;;  %v841_v12 = vmax.f32 %v757_v6, 0.0  ;;  %v844_v2 = vmax.f32 %v764_v57, 0.0 }
 0x103   : > { %v816_v62 = vmax.f32 %v694_v56, 0.0  ;;  %v1248_v35 = vmul.f32 %v2288_v47, %v800_v59  ;;  %v762_v56 = vadd.f32 %v2313_v61, %v2362_v8 }
 0x105   : > { %v1264_v3 = vmul.f32 %v2344_v46, %v816_v62  ;;  %v733_v4 = vpop.f32.mrf.mxu2  ;;  %v2429_v30 = vpop.f32.mrf.mxu3  ;;  %v1833_v15 = vpack.c.bf16 %v1248_v35, %v1247_v0  ;;  %v754_v46 = vadd.f32 %v2313_v61, %v2332_v32  ;;  %v759_v0 = vadd.f32 %v2313_v61, %v2352_v10 }
 0x106   : > { %v734_v63 = vadd.f32 %v2313_v61, %v733_v4  ;;  %v2432_v7 = vpop.permute.xlu1 %1151  ;;  %v656_v13 = vpop.f32.mrf.mxu0 }
 0x107   : > { %v1873_v22 = vpack.c.bf16 %v1264_v3, %v1263_v1  ;;  %v2434_v43 = vpop.permute.xlu0 %1146  ;;  %1973 = vst [vmem:[%s2120_s10 + $0x20] sm:$0xff] %v1833_v15   ;;  %v657_v36 = vadd.f32 %v2313_v61, %v656_v13  ;;  %v840_v34 = vmax.f32 %v754_v46, 0.0  ;;  %v1187_v35 = vpop.permute.xlu2 %1186 }
 0x108   : > { %v832_v47 = vmax.f32 %v734_v63, 0.0  ;;  %v696_v48 = vpop.f32.mrf.mxu1  ;;  %v843_v63 = vmax.f32 %v762_v56, 0.0 }
 0x109   : > { %1981 = vst [vmem:[%s2120_s10 + $0x60] sm:$0xff] %v1873_v22   ;;  %v697_v51 = vadd.f32 %v2313_v61, %v696_v48  ;;  %v801_v39 = vmax.f32 %v657_v36, 0.0  ;;  %v842_v48 = vmax.f32 %v759_v0, 0.0 }
 0x10a   : > { %v1280_v24 = vmul.f32 %v2387_v26, %v832_v47 }
 0x10b   : > { %v817_v59 = vmax.f32 %v697_v51, 0.0  ;;  %v1249_v15 = vmul.f32 %v2284_v44, %v801_v39  ;;  %v1292_v44 = vmul.f32 %v1187_v35, %v844_v2  ;;  %v1289_v51 = vmul.f32 %v1172_v20, %v841_v12 }
 0x10c   : > { %v1913_v33 = vpack.c.bf16 %v1280_v24, %v1279_v37 }
 0x10d   : > { %v736_v11 = vpop.f32.mrf.mxu2  ;;  %v2445_v38 = vpop.f32.mrf.mxu3  ;;  %v1265_v22 = vmul.f32 %v2308_v60, %v817_v59 }
 0x10e   : > { %1989 = vst [vmem:[%s2120_s10 + $0xa0] sm:$0xff] %v1913_v33   ;;  %v1167_v50 = vpop.permute.xlu1 %1166  ;;  %v658_v29 = vpop.f32.mrf.mxu0  ;;  %v737_v45 = vadd.f32 %v2313_v61, %v736_v11 }
 0x10f   : > { %v1288_v32 = vmul.f32 %v1167_v50, %v840_v34  ;;  %v1162_v54 = vpop.permute.xlu0 %1161  ;;  %v659_v9 = vadd.f32 %v2313_v61, %v658_v29  ;;  %v1202_v20 = vpop.permute.xlu2 %1201 }
 0x110   : > { %v1287_v26 = vmul.f32 %v1162_v54, %v839_v40  ;;  %v698_v55 = vpop.f32.mrf.mxu1  ;;  %v833_v46 = vmax.f32 %v737_v45, 0.0  ;;  %v769_v40 = vadd.f32 %v2313_v61, %v2405_v18 }
 0x111   : > { %v699_v62 = vadd.f32 %v2313_v61, %v698_v55  ;;  %v802_v3 = vmax.f32 %v659_v9, 0.0 }
 0x112   : > { %v1933_v1 = vpack.c.bf16 %v1288_v32, %v1287_v26  ;;  %v767_v32 = vadd.f32 %v2313_v61, %v2393_v41  ;;  %v1281_v54 = vmul.f32 %v2420_v49, %v833_v46  ;;  %v846_v9 = vmax.f32 %v769_v40, 0.0 }
 0x113   : > { %v818_v4 = vmax.f32 %v699_v62, 0.0  ;;  %v1250_v8 = vmul.f32 %v2245_v19, %v802_v3  ;;  %v772_v3 = vadd.f32 %v2313_v61, %v2413_v42 }
 0x114   : > { %1993 = vst [vmem:[%s2120_s10 + $0xc0] sm:$0xff] %v1933_v1   ;;  %v845_v57 = vmax.f32 %v767_v32, 0.0 }
 0x115   : > { %v1266_v13 = vmul.f32 %v2356_v16, %v818_v4  ;;  %v738_v10 = vpop.f32.mrf.mxu2  ;;  %v778_v47 = vpop.f32.mrf.mxu3  ;;  %v1838_v28 = vpack.c.bf16 %v1250_v8, %v1249_v15  ;;  %v777_v4 = vadd.f32 %v2313_v61, %v2445_v38  ;;  %v774_v8 = vadd.f32 %v2313_v61, %v2429_v30 }
 0x116   : > { %v739_v37 = vadd.f32 %v2313_v61, %v738_v10  ;;  %v1182_v24 = vpop.permute.xlu1 %1181  ;;  %v661_v34 = vpop.f32.mrf.mxu0  ;;  %v779_v41 = vadd.f32 %v2313_v61, %v778_v47 }
 0x117   : > { %v1878_v33 = vpack.c.bf16 %v1266_v13, %v1265_v22  ;;  %v1291_v19 = vmul.f32 %v1182_v24, %v843_v63  ;;  %v1177_v36 = vpop.permute.xlu0 %1176  ;;  %1974 = vst [vmem:[%s2120_s10 + $0x28] sm:$0xff] %v1838_v28   ;;  %v662_v26 = vadd.f32 %v2313_v61, %v661_v34  ;;  %v849_v46 = vmax.f32 %v777_v4, 0.0 }
 0x118   : > { %v834_v60 = vmax.f32 %v739_v37, 0.0  ;;  %v1290_v16 = vmul.f32 %v1177_v36, %v842_v48  ;;  %v701_v11 = vpop.f32.mrf.mxu1  ;;  %v850_v13 = vmax.f32 %v779_v41, 0.0  ;;  %v847_v48 = vmax.f32 %v772_v3, 0.0 }
 0x119   : > { %1982 = vst [vmem:[%s2120_s10 + $0x68] sm:$0xff] %v1878_v33   ;;  %v1943_v50 = vpack.c.bf16 %v1292_v44, %v1291_v19  ;;  %v702_v18 = vadd.f32 %v2313_v61, %v701_v11  ;;  %v803_v0 = vmax.f32 %v662_v26, 0.0  ;;  %v848_v24 = vmax.f32 %v774_v8, 0.0  ;;  %v1217_v44 = vpop.permute.xlu2 %1216 }
 0x11a   : > { %v1282_v29 = vmul.f32 %v2418_v31, %v834_v60  ;;  %v1938_v6 = vpack.c.bf16 %v1290_v16, %v1289_v51  ;;  %v1298_v34 = vmul.f32 %v1217_v44, %v850_v13  ;;  %v1295_v16 = vmul.f32 %v1202_v20, %v847_v48 }
 0x11b   : > { %1995 = vst [vmem:[%s2120_s10 + $0xd0] sm:$0xff] %v1943_v50   ;;  %v819_v12 = vmax.f32 %v702_v18, 0.0  ;;  %v1251_v47 = vmul.f32 %v2301_v53, %v803_v0 }
 0x11c   : > { %v1918_v39 = vpack.c.bf16 %v1282_v29, %v1281_v54  ;;  %1994 = vst [vmem:[%s2120_s10 + $0xc8] sm:$0xff] %v1938_v6  }
 0x11d   : > { %v741_v55 = vpop.f32.mrf.mxu2  ;;  %v781_v56 = vpop.f32.mrf.mxu3  ;;  %v1267_v38 = vmul.f32 %v2354_v14, %v819_v12 }
 0x11e   : > { %1990 = vst [vmem:[%s2120_s10 + $0xa8] sm:$0xff] %v1918_v39   ;;  %v1197_v59 = vpop.permute.xlu1 %1196  ;;  %v663_v31 = vpop.f32.mrf.mxu0  ;;  %v742_v63 = vadd.f32 %v2313_v61, %v741_v55  ;;  %v782_v29 = vadd.f32 %v2313_v61, %v781_v56 }
 0x11f   : > { %v1294_v49 = vmul.f32 %v1197_v59, %v846_v9  ;;  %v1192_v62 = vpop.permute.xlu0 %1191  ;;  %v664_v45 = vadd.f32 %v2313_v61, %v663_v31 }
 0x120   : > { %v1293_v35 = vmul.f32 %v1192_v62, %v845_v57  ;;  %v703_v1 = vpop.f32.mrf.mxu1  ;;  %v835_v33 = vmax.f32 %v742_v63, 0.0  ;;  %v851_v59 = vmax.f32 %v782_v29, 0.0 }
 0x121   : > { %v704_v15 = vadd.f32 %v2313_v61, %v703_v1  ;;  %v804_v22 = vmax.f32 %v664_v45, 0.0 }
 0x122   : > { %v1948_v2 = vpack.c.bf16 %v1294_v49, %v1293_v35  ;;  %v1283_v54 = vmul.f32 %v2398_v5, %v835_v33 }
 0x123   : > { %v820_v10 = vmax.f32 %v704_v15, 0.0  ;;  %v1252_v42 = vmul.f32 %v2299_v52, %v804_v22 }
 0x124   : > { %1996 = vst [vmem:[%s2120_s10 + $0xd8] sm:$0xff] %v1948_v2  }
 0x125   : > { %v1268_v28 = vmul.f32 %v2326_v17, %v820_v10  ;;  %v743_v37 = vpop.f32.mrf.mxu2  ;;  %v783_v30 = vpop.f32.mrf.mxu3  ;;  %v1843_v19 = vpack.c.bf16 %v1252_v42, %v1251_v47 }
 0x126   : > { %v744_v36 = vadd.f32 %v2313_v61, %v743_v37  ;;  %v1212_v53 = vpop.permute.xlu1 %1211  ;;  %v666_v14 = vpop.f32.mrf.mxu0  ;;  %v784_v50 = vadd.f32 %v2313_v61, %v783_v30 }
 0x127   : > { %v1883_v51 = vpack.c.bf16 %v1268_v28, %v1267_v38  ;;  %v1297_v52 = vmul.f32 %v1212_v53, %v849_v46  ;;  %v1207_v60 = vpop.permute.xlu0 %1206  ;;  %1975 = vst [vmem:[%s2120_s10 + $0x30] sm:$0xff] %v1843_v19   ;;  %v667_v20 = vadd.f32 %v2313_v61, %v666_v14 }
 0x128   : > { %v836_v17 = vmax.f32 %v744_v36, 0.0  ;;  %v1296_v11 = vmul.f32 %v1207_v60, %v848_v24  ;;  %v706_v40 = vpop.f32.mrf.mxu1  ;;  %v852_v9 = vmax.f32 %v784_v50, 0.0 }
 0x129   : > { %1983 = vst [vmem:[%s2120_s10 + $0x70] sm:$0xff] %v1883_v51   ;;  %v1958_v32 = vpack.c.bf16 %v1298_v34, %v1297_v52  ;;  %v707_v18 = vadd.f32 %v2313_v61, %v706_v40  ;;  %v805_v62 = vmax.f32 %v667_v20, 0.0 }
 0x12a   : > { %v1284_v6 = vmul.f32 %v2434_v43, %v836_v17  ;;  %v1953_v39 = vpack.c.bf16 %v1296_v11, %v1295_v16 }
 0x12b   : > { %1998 = vst [vmem:[%s2120_s10 + $0xe8] sm:$0xff] %v1958_v32   ;;  %v821_v35 = vmax.f32 %v707_v18, 0.0  ;;  %v1253_v8 = vmul.f32 %v2256_v27, %v805_v62 }
 0x12c   : > { %v1923_v26 = vpack.c.bf16 %v1284_v6, %v1283_v54  ;;  %1997 = vst [vmem:[%s2120_s10 + $0xe0] sm:$0xff] %v1953_v39  }
 0x12d   : > { %v746_v55 = vpop.f32.mrf.mxu2  ;;  %v786_v57 = vpop.f32.mrf.mxu3  ;;  %v1269_v2 = vmul.f32 %v2367_v25, %v821_v35 }
 0x12e   : > { %1991 = vst [vmem:[%s2120_s10 + $0xb0] sm:$0xff] %v1923_v26   ;;  %v1227_v41 = vpop.permute.xlu1 %1226  ;;  %v668_v56 = vpop.f32.mrf.mxu0  ;;  %v747_v45 = vadd.f32 %v2313_v61, %v746_v55  ;;  %v787_v3 = vadd.f32 %v2313_v61, %v786_v57 }
 0x12f   : > { %v1300_v5 = vmul.f32 %v1227_v41, %v852_v9  ;;  %v1222_v49 = vpop.permute.xlu0 %1221  ;;  %v669_v31 = vadd.f32 %v2313_v61, %v668_v56 }
 0x130   : > { %v1299_v43 = vmul.f32 %v1222_v49, %v851_v59  ;;  %v708_v0 = vpop.f32.mrf.mxu1  ;;  %v837_v22 = vmax.f32 %v747_v45, 0.0  ;;  %v853_v42 = vmax.f32 %v787_v3, 0.0 }
 0x131   : > { %v709_v1 = vadd.f32 %v2313_v61, %v708_v0  ;;  %v806_v12 = vmax.f32 %v669_v31, 0.0 }
 0x132   : > { %v1963_v4 = vpack.c.bf16 %v1300_v5, %v1299_v43  ;;  %v1285_v30 = vmul.f32 %v2432_v7, %v837_v22 }
 0x133   : > { %v822_v15 = vmax.f32 %v709_v1, 0.0  ;;  %v1254_v63 = vmul.f32 %v2306_v58, %v806_v12  ;;  %v1232_v58 = vpop.permute.xlu2 %1231 }
 0x134   : > { %1999 = vst [vmem:[%s2120_s10 + $0xf0] sm:$0xff] %v1963_v4  }
 0x135   : > { %v1270_v13 = vmul.f32 %v2364_v23, %v822_v15  ;;  %v748_v10 = vpop.f32.mrf.mxu2  ;;  %v788_v47 = vpop.f32.mrf.mxu3  ;;  %v1848_v48 = vpack.c.bf16 %v1254_v63, %v1253_v8  ;;  %v1301_v23 = vmul.f32 %v1232_v58, %v853_v42 }
 0x136   : > { %v749_v46 = vadd.f32 %v2313_v61, %v748_v10  ;;  %v789_v38 = vadd.f32 %v2313_v61, %v788_v47 }
 0x137   : > { %v1888_v27 = vpack.c.bf16 %v1270_v13, %v1269_v2  ;;  %1976 = vst [vmem:[%s2120_s10 + $0x38] sm:$0xff] %v1848_v48   ;;  %v1237_v25 = vpop.permute.xlu0 %1236 }
 0x138   : > { %v838_v28 = vmax.f32 %v749_v46, 0.0  ;;  %v854_v37 = vmax.f32 %v789_v38, 0.0 }
 0x139   : > { %1984 = vst [vmem:[%s2120_s10 + $0x78] sm:$0xff] %v1888_v27  }
 0x13a   : > { %v1286_v24 = vmul.f32 %v2415_v21, %v838_v28  ;;  %v1302_v44 = vmul.f32 %v1237_v25, %v854_v37 }
 0x13c   : > { %v1928_v33 = vpack.c.bf16 %v1286_v24, %v1285_v30  ;;  %v1968_v19 = vpack.c.bf16 %v1302_v44, %v1301_v23 }
 0x13e   : > { %1992 = vst [vmem:[%s2120_s10 + $0xb8] sm:$0xff] %v1928_v33  }
 0x13f   : > { %2000 = vst [vmem:[%s2120_s10 + $0xf8] sm:$0xff] %v1968_v19  }
 0x140 PF: > { %s1431_s30 = sld [smem:[#allocation3 + %s2101_s23]] }
 0x146   : > { %p1768_p5 = scmp.ne.s32.totalorder %s1431_s30, 0 }
 0x148   : > { %1435 = sbr.rel (%p1768_p5) target bundleno = 398 (0x18e), region = 44 }
 0x14d   : > { %v2061_v61 = vmov 0  }
 0x14e   : > { %1436 = vst [vmem:[%s2120_s10] sm:$0xf] %v2061_v61 }
 0x14f   : > { %1437 = vst [vmem:[%s2120_s10 + $0x4] sm:$0xf] %v2061_v61 }
 0x150   : > { %1438 = vst [vmem:[%s2120_s10 + $0x8] sm:$0xf] %v2061_v61 }
 0x151   : > { %1439 = vst [vmem:[%s2120_s10 + $0xc] sm:$0xf] %v2061_v61 }
 0x152   : > { %1440 = vst [vmem:[%s2120_s10 + $0x10] sm:$0xf] %v2061_v61 }
 0x153   : > { %1441 = vst [vmem:[%s2120_s10 + $0x14] sm:$0xf] %v2061_v61 }
 0x154   : > { %1442 = vst [vmem:[%s2120_s10 + $0x18] sm:$0xf] %v2061_v61 }
 0x155   : > { %1443 = vst [vmem:[%s2120_s10 + $0x1c] sm:$0xf] %v2061_v61 }
 0x156   : > { %1444 = vst [vmem:[%s2120_s10 + $0x20] sm:$0xf] %v2061_v61 }
 0x157   : > { %1445 = vst [vmem:[%s2120_s10 + $0x24] sm:$0xf] %v2061_v61 }
 0x158   : > { %1446 = vst [vmem:[%s2120_s10 + $0x28] sm:$0xf] %v2061_v61 }
 0x159   : > { %1447 = vst [vmem:[%s2120_s10 + $0x2c] sm:$0xf] %v2061_v61 }
 0x15a   : > { %1448 = vst [vmem:[%s2120_s10 + $0x30] sm:$0xf] %v2061_v61 }
 0x15b   : > { %1449 = vst [vmem:[%s2120_s10 + $0x34] sm:$0xf] %v2061_v61 }
 0x15c   : > { %1450 = vst [vmem:[%s2120_s10 + $0x38] sm:$0xf] %v2061_v61 }
 0x15d   : > { %1451 = vst [vmem:[%s2120_s10 + $0x3c] sm:$0xf] %v2061_v61 }
 0x15e   : > { %1452 = vst [vmem:[%s2120_s10 + $0x40] sm:$0xf] %v2061_v61 }
 0x15f   : > { %1453 = vst [vmem:[%s2120_s10 + $0x44] sm:$0xf] %v2061_v61 }
 0x160   : > { %1454 = vst [vmem:[%s2120_s10 + $0x48] sm:$0xf] %v2061_v61 }
 0x161   : > { %1455 = vst [vmem:[%s2120_s10 + $0x4c] sm:$0xf] %v2061_v61 }
 0x162   : > { %1456 = vst [vmem:[%s2120_s10 + $0x50] sm:$0xf] %v2061_v61 }
 0x163   : > { %1457 = vst [vmem:[%s2120_s10 + $0x54] sm:$0xf] %v2061_v61 }
 0x164   : > { %1458 = vst [vmem:[%s2120_s10 + $0x58] sm:$0xf] %v2061_v61 }
 0x165   : > { %1459 = vst [vmem:[%s2120_s10 + $0x5c] sm:$0xf] %v2061_v61 }
 0x166   : > { %1460 = vst [vmem:[%s2120_s10 + $0x60] sm:$0xf] %v2061_v61 }
 0x167   : > { %1461 = vst [vmem:[%s2120_s10 + $0x64] sm:$0xf] %v2061_v61 }
 0x168   : > { %1462 = vst [vmem:[%s2120_s10 + $0x68] sm:$0xf] %v2061_v61 }
 0x169   : > { %1463 = vst [vmem:[%s2120_s10 + $0x6c] sm:$0xf] %v2061_v61 }
 0x16a   : > { %1464 = vst [vmem:[%s2120_s10 + $0x70] sm:$0xf] %v2061_v61 }
 0x16b   : > { %1465 = vst [vmem:[%s2120_s10 + $0x74] sm:$0xf] %v2061_v61 }
 0x16c   : > { %1466 = vst [vmem:[%s2120_s10 + $0x78] sm:$0xf] %v2061_v61 }
 0x16d   : > { %1467 = vst [vmem:[%s2120_s10 + $0x7c] sm:$0xf] %v2061_v61 }
 0x16e   : > { %1468 = vst [vmem:[%s2120_s10 + $0x80] sm:$0xf] %v2061_v61 }
 0x16f   : > { %1469 = vst [vmem:[%s2120_s10 + $0x84] sm:$0xf] %v2061_v61 }
 0x170   : > { %1470 = vst [vmem:[%s2120_s10 + $0x88] sm:$0xf] %v2061_v61 }
 0x171   : > { %1471 = vst [vmem:[%s2120_s10 + $0x8c] sm:$0xf] %v2061_v61 }
 0x172   : > { %1472 = vst [vmem:[%s2120_s10 + $0x90] sm:$0xf] %v2061_v61 }
 0x173   : > { %1473 = vst [vmem:[%s2120_s10 + $0x94] sm:$0xf] %v2061_v61 }
 0x174   : > { %1474 = vst [vmem:[%s2120_s10 + $0x98] sm:$0xf] %v2061_v61 }
 0x175   : > { %1475 = vst [vmem:[%s2120_s10 + $0x9c] sm:$0xf] %v2061_v61 }
 0x176   : > { %1476 = vst [vmem:[%s2120_s10 + $0xa0] sm:$0xf] %v2061_v61 }
 0x177   : > { %1477 = vst [vmem:[%s2120_s10 + $0xa4] sm:$0xf] %v2061_v61 }
 0x178   : > { %1478 = vst [vmem:[%s2120_s10 + $0xa8] sm:$0xf] %v2061_v61 }
 0x179   : > { %1479 = vst [vmem:[%s2120_s10 + $0xac] sm:$0xf] %v2061_v61 }
 0x17a   : > { %1480 = vst [vmem:[%s2120_s10 + $0xb0] sm:$0xf] %v2061_v61 }
 0x17b   : > { %1481 = vst [vmem:[%s2120_s10 + $0xb4] sm:$0xf] %v2061_v61 }
 0x17c   : > { %1482 = vst [vmem:[%s2120_s10 + $0xb8] sm:$0xf] %v2061_v61 }
 0x17d   : > { %1483 = vst [vmem:[%s2120_s10 + $0xbc] sm:$0xf] %v2061_v61 }
 0x17e   : > { %1484 = vst [vmem:[%s2120_s10 + $0xc0] sm:$0xf] %v2061_v61 }
 0x17f   : > { %1485 = vst [vmem:[%s2120_s10 + $0xc4] sm:$0xf] %v2061_v61 }
 0x180   : > { %1486 = vst [vmem:[%s2120_s10 + $0xc8] sm:$0xf] %v2061_v61 }
 0x181   : > { %1487 = vst [vmem:[%s2120_s10 + $0xcc] sm:$0xf] %v2061_v61 }
 0x182   : > { %1488 = vst [vmem:[%s2120_s10 + $0xd0] sm:$0xf] %v2061_v61 }
 0x183   : > { %1489 = vst [vmem:[%s2120_s10 + $0xd4] sm:$0xf] %v2061_v61 }
 0x184   : > { %1490 = vst [vmem:[%s2120_s10 + $0xd8] sm:$0xf] %v2061_v61 }
 0x185   : > { %1491 = vst [vmem:[%s2120_s10 + $0xdc] sm:$0xf] %v2061_v61 }
 0x186   : > { %1492 = vst [vmem:[%s2120_s10 + $0xe0] sm:$0xf] %v2061_v61 }
 0x187   : > { %1493 = vst [vmem:[%s2120_s10 + $0xe4] sm:$0xf] %v2061_v61 }
 0x188   : > { %1494 = vst [vmem:[%s2120_s10 + $0xe8] sm:$0xf] %v2061_v61 }
 0x189   : > { %1495 = vst [vmem:[%s2120_s10 + $0xec] sm:$0xf] %v2061_v61 }
 0x18a   : > { %1496 = vst [vmem:[%s2120_s10 + $0xf0] sm:$0xf] %v2061_v61 }
 0x18b   : > { %1497 = vst [vmem:[%s2120_s10 + $0xf4] sm:$0xf] %v2061_v61 }
 0x18c   : > { %1498 = vst [vmem:[%s2120_s10 + $0xf8] sm:$0xf] %v2061_v61 }
 0x18d   : > { %1499 = vst [vmem:[%s2120_s10 + $0xfc] sm:$0xf] %v2061_v61 }
 0x18e PF: > { %s23_s22 = sadd.s32 1, %s2057_s22  }
 0x18f   : > { %p20_p6 = scmp.ge.s32.totalorder %s23_s22, 16  }
 0x191   :  { %22 = sbr.rel (!%p20_p6) target bundleno = 7 (0x7), region = 77 }

</bundles_post_ra>
